<compile_context>
chip_gen: v7x
topology: tpu7x:2x2x1
jax: 0.10.0
libtpu: 0.0.40
codegen_flags: <defaults>
</compile_context>

<pallas_src>
import functools

import jax
import jax.numpy as jnp
from jax.experimental import pallas as pl
from jax.experimental.pallas import tpu as pltpu


def _round_up(n, m):
    return (n + m - 1) // m * m


def _fused_mlp_kernel(*refs, n_layers):
    # refs = (x_ref, w0_ref, b0_ref, w1_ref, b1_ref, ..., o_ref); all in VMEM.
    x_ref = refs[0]
    o_ref = refs[-1]
    x = x_ref[...]                                    # (B_pad, D0_pad)
    for i in range(n_layers):                         # static unroll over layers
        w = refs[1 + 2 * i][...]                      # (Din_pad, Dout_pad)
        b = refs[2 + 2 * i][...]                      # (1, Dout_pad) -> broadcasts
        y = jnp.dot(x, w, preferred_element_type=jnp.float32) + b   # MXU
        if i != n_layers - 1:
            y = jnp.tanh(y)                           # EUP slot, hides under MXU
        x = y                                         # stays in vregs — no HBM trip
    o_ref[...] = x.astype(o_ref.dtype)


def mlp_forward(params, x):
    """Fused forward: hidden layers Linear+Tanh, final Linear (no activation)."""
    B, Din = x.shape
    dims = [Din] + [w.shape[1] for (w, _) in params]
    B_pad = _round_up(B, 8)
    dims_pad = [_round_up(d, 128) for d in dims]      # lane-dense feature axes

    # Zero-pad activations / weights / biases to (8,128)-aligned shapes.
    x_p = jnp.zeros((B_pad, dims_pad[0]), jnp.float32).at[:B, :Din].set(x)
    inputs = [x_p]
    in_specs = [pl.BlockSpec((B_pad, dims_pad[0]), lambda: (0, 0))]
    for i, (w, b) in enumerate(params):
        din_p, dout_p = dims_pad[i], dims_pad[i + 1]
        w_p = jnp.zeros((din_p, dout_p), jnp.float32).at[: w.shape[0], : w.shape[1]].set(w)
        b_p = jnp.zeros((1, dout_p), jnp.float32).at[:, : b.shape[1]].set(b)
        inputs += [w_p, b_p]
        in_specs += [
            pl.BlockSpec((din_p, dout_p), lambda: (0, 0)),
            pl.BlockSpec((1, dout_p), lambda: (0, 0)),
        ]

    kernel = functools.partial(_fused_mlp_kernel, n_layers=len(params))
    y_p = pl.pallas_call(
        kernel,
        out_shape=jax.ShapeDtypeStruct((B_pad, dims_pad[-1]), jnp.float32),
        in_specs=in_specs,
        out_specs=pl.BlockSpec((B_pad, dims_pad[-1]), lambda: (0, 0)),
        # Explicit VMEM cap so the same plan is safe on v7x (64 MiB VMEM).
        compiler_params=pltpu.CompilerParams(vmem_limit_bytes=64 * 1024 * 1024),
    )(*inputs)
    return y_p[:B, : dims[-1]]                        # strip padding (cheap XLA slice)


def init_mlp_params(key, input_dim, hidden_sizes, out_dim):
    """Deterministic Xavier-normal-ish init matching nn.Linear shapes.

    Weights stored as [in, out] (PyTorch's [out, in] pre-transposed) so the
    kernel computes y = x @ W + b directly on the MXU.
    """
    sizes = [input_dim] + list(hidden_sizes) + [out_dim]
    params = []
    for din, dout in zip(sizes[:-1], sizes[1:]):
        key, kw, kb = jax.random.split(key, 3)
        std = (2.0 / (din + dout)) ** 0.5             # xavier_normal_
        w = jax.random.normal(kw, (din, dout), jnp.float32) * std
        b = jax.random.normal(kb, (1, dout), jnp.float32) * 0.01
        params.append((w, b))
    return params


def mlp_reference(params, x):
    n = len(params)
    for i, (w, b) in enumerate(params):
        x = x @ w + b
        if i != n - 1:
            x = jnp.tanh(x)
    return x


if __name__ == "__main__":
    key = jax.random.PRNGKey(0)
    kx, kp = jax.random.split(key)

    batch, input_dim, hidden_sizes, out_dim = 8, 16, [32, 32], 8
    x = jax.random.normal(kx, (batch, input_dim), jnp.float32)
    params = init_mlp_params(kp, input_dim, hidden_sizes, out_dim)

    fwd = jax.jit(mlp_forward)
    out = fwd(params, x)
    out = jax.block_until_ready(out)

    ref = mlp_reference(params, x)
    assert out.shape == (batch, out_dim)
    assert jnp.allclose(out, ref, atol=1e-5, rtol=1e-5), "mismatch vs reference"
    print("KERNEL_OK")
</pallas_src>

<mosaic_0001>
module attributes {stable_mosaic.version = 11 : i64} {
  func.func @_fused_mlp_kernel(%arg0: memref<8x128xf32, #tpu.memory_space<vmem>>, %arg1: memref<128x128xf32, #tpu.memory_space<vmem>>, %arg2: memref<1x128xf32, #tpu.memory_space<vmem>>, %arg3: memref<128x128xf32, #tpu.memory_space<vmem>>, %arg4: memref<1x128xf32, #tpu.memory_space<vmem>>, %arg5: memref<128x128xf32, #tpu.memory_space<vmem>>, %arg6: memref<1x128xf32, #tpu.memory_space<vmem>>, %arg7: memref<8x128xf32, #tpu.memory_space<vmem>>) attributes {dimension_semantics = [], scalar_prefetch = 0 : i64, scratch_operands = 0 : i64, tpu.core_type = #tpu.core_type<tc>} {
    %c0 = arith.constant 0 : index
    %c0_0 = arith.constant 0 : index
    %0 = vector.load %arg0[%c0, %c0_0] : memref<8x128xf32, #tpu.memory_space<vmem>>, vector<8x128xf32>
    %c0_1 = arith.constant 0 : index
    %c0_2 = arith.constant 0 : index
    %1 = vector.load %arg1[%c0_1, %c0_2] : memref<128x128xf32, #tpu.memory_space<vmem>>, vector<128x128xf32>
    %c0_3 = arith.constant 0 : index
    %c0_4 = arith.constant 0 : index
    %2 = vector.load %arg2[%c0_3, %c0_4] : memref<1x128xf32, #tpu.memory_space<vmem>>, vector<1x128xf32>
    %cst = arith.constant dense<0.000000e+00> : vector<8x128xf32>
    %3 = tpu.matmul %0, %1, %cst {dimension_numbers = #tpu.dot_dimension_numbers<[1], [0], [0], [1], [0, 0, 1, 1], [], []>} : vector<8x128xf32>, vector<128x128xf32>, vector<8x128xf32> -> vector<8x128xf32>
    %4 = vector.broadcast %2 : vector<1x128xf32> to vector<8x128xf32>
    %5 = arith.addf %3, %4 : vector<8x128xf32>
    %6 = math.tanh %5 : vector<8x128xf32>
    %c0_5 = arith.constant 0 : index
    %c0_6 = arith.constant 0 : index
    %7 = vector.load %arg3[%c0_5, %c0_6] : memref<128x128xf32, #tpu.memory_space<vmem>>, vector<128x128xf32>
    %c0_7 = arith.constant 0 : index
    %c0_8 = arith.constant 0 : index
    %8 = vector.load %arg4[%c0_7, %c0_8] : memref<1x128xf32, #tpu.memory_space<vmem>>, vector<1x128xf32>
    %cst_9 = arith.constant dense<0.000000e+00> : vector<8x128xf32>
    %9 = tpu.matmul %6, %7, %cst_9 {dimension_numbers = #tpu.dot_dimension_numbers<[1], [0], [0], [1], [0, 0, 1, 1], [], []>} : vector<8x128xf32>, vector<128x128xf32>, vector<8x128xf32> -> vector<8x128xf32>
    %10 = vector.broadcast %8 : vector<1x128xf32> to vector<8x128xf32>
    %11 = arith.addf %9, %10 : vector<8x128xf32>
    %12 = math.tanh %11 : vector<8x128xf32>
    %c0_10 = arith.constant 0 : index
    %c0_11 = arith.constant 0 : index
    %13 = vector.load %arg5[%c0_10, %c0_11] : memref<128x128xf32, #tpu.memory_space<vmem>>, vector<128x128xf32>
    %c0_12 = arith.constant 0 : index
    %c0_13 = arith.constant 0 : index
    %14 = vector.load %arg6[%c0_12, %c0_13] : memref<1x128xf32, #tpu.memory_space<vmem>>, vector<1x128xf32>
    %cst_14 = arith.constant dense<0.000000e+00> : vector<8x128xf32>
    %15 = tpu.matmul %12, %13, %cst_14 {dimension_numbers = #tpu.dot_dimension_numbers<[1], [0], [0], [1], [0, 0, 1, 1], [], []>} : vector<8x128xf32>, vector<128x128xf32>, vector<8x128xf32> -> vector<8x128xf32>
    %16 = vector.broadcast %14 : vector<1x128xf32> to vector<8x128xf32>
    %17 = arith.addf %15, %16 : vector<8x128xf32>
    %c0_15 = arith.constant 0 : index
    %c0_16 = arith.constant 0 : index
    %18 = vector.load %arg7[%c0_15, %c0_16] : memref<8x128xf32, #tpu.memory_space<vmem>>, vector<8x128xf32>
    tpu.vector_store %arg7[%c0_15, %c0_16], %17 {strides = array<i32>} : memref<8x128xf32, #tpu.memory_space<vmem>>, vector<8x128xf32>,
    return
  }
}

</mosaic_0001>

<bundles_post_ra>
// kernel: mlp_forward.1
= control target key start
LH: loop header
LB: loop body
LE: loop exit
PB: predicated region body
PF: predicated region fallthrough
CT: control target
= control target key end

     0   :  { %12 = vsyncpa [#allocation3], 0  ;;  %s1037_s0 = inlined_call_operand.hbm [shape: f32[8,128], index: 0, kind: input, shape index: {}]   ;;  %s1038_s1 = inlined_call_operand.hbm [shape: f32[128,128], index: 1, kind: input, shape index: {}]   ;;  %s1039_s2 = inlined_call_operand.hbm [shape: f32[1,128], index: 2, kind: input, shape index: {}]   ;;  %s1040_s3 = inlined_call_operand.hbm [shape: f32[128,128], index: 3, kind: input, shape index: {}]   ;;  %s1041_s4 = inlined_call_operand.hbm [shape: f32[1,128], index: 4, kind: input, shape index: {}]   ;;  %s1042_s5 = inlined_call_operand.hbm [shape: f32[128,128], index: 5, kind: input, shape index: {}]   ;;  %s1043_s6 = inlined_call_operand.hbm [shape: f32[1,128], index: 6, kind: input, shape index: {}]   ;;  %s1044_s7 = inlined_call_operand.hbm [shape: f32[8,128], index: 7, kind: output, shape index: {}]  }
   0x1   :  { %13 = vsyncpa [#allocation6], 0 }
   0x2   :  { %14 = vsyncpa [#allocation9], 0 }
   0x3   :  { %15 = vsyncpa [#allocation12], 0 }
   0x4   :  { %16 = vsyncpa [#allocation4], 0  ;;  %s849_s24 = smov [#allocation5]   ;;  %s663_s28 = scalar_lea.hbm %s1038_s1, 2048 }
   0x5   :  { %s32_s25 = sshll.u32 %s849_s24, 4  ;;  %p664_p0 = scmp.ne.s32.totalorder %s1038_s1, %s663_s28  ;;  %s33_s25 = int_to_ptr.vmem [resolvable:$true] %s32_s25 }
   0x6   :  { %p667_p1 = scmp.lt.u32.totalorder %s663_s28, %s1038_s1 }
   0x8   :  { %p669_p2 = pnand %p667_p1, %p664_p0 }
   0xa   :  { %672 = shalt.err (!%p669_p2)
}
   0xb   :  { %s673_s10 = scalar_lea.vmem %s33_s25, 2048  ;;  %p678_p4 = scmp.lt.s32.totalorder %s33_s25, %s33_s25 }
   0xc   :  { %p674_p3 = scmp.ne.s32.totalorder %s33_s25, %s673_s10  ;;  %p679_p5 = scmp.lt.s32.totalorder %s673_s10, %s673_s10 }
   0xe   :  { %p680_p6 = por %p679_p5, %p678_p4 }
  0x10   :  { %p681_p7 = pnand %p680_p6, %p674_p3 }
  0x12   :  { %684 = shalt.err (!%p681_p7)
}
  0x13   :  { %s850_s11 = smov 128   ;;  %s851_s12 = smov 8  }
  0x14   :  { %38 = dma.hbm_to_vmem [thread:$0]  %s1038_s1, 2048, %s33_s25, [#allocation6], %s850_s11, %s850_s11, %s851_s12  }
  0x15   :  { %s852_s15 = smov [#allocation8]   ;;  %s853_s17 = smov [#allocation11]  }
  0x16   :  { %s54_s16 = sshll.u32 %s852_s15, 4  ;;  %s76_s18 = sshll.u32 %s853_s17, 4  ;;  %s55_s16 = int_to_ptr.vmem [resolvable:$true] %s54_s16  ;;  %s77_s18 = int_to_ptr.vmem [resolvable:$true] %s76_s18 }
  0x17   :  { %s685_s21 = scalar_lea.hbm %s1040_s3, 2048 }
  0x18   :  { %p686_p8 = scmp.ne.s32.totalorder %s1040_s3, %s685_s21  ;;  %p689_p9 = scmp.lt.u32.totalorder %s685_s21, %s1040_s3 }
  0x1a   :  { %p691_p10 = pnand %p689_p9, %p686_p8 }
  0x1c   :  { %694 = shalt.err (!%p691_p10)
}
  0x1d   :  { %s695_s1 = scalar_lea.vmem %s55_s16, 2048  ;;  %p700_p12 = scmp.lt.s32.totalorder %s55_s16, %s55_s16 }
  0x1e   :  { %p696_p11 = scmp.ne.s32.totalorder %s55_s16, %s695_s1  ;;  %p701_p13 = scmp.lt.s32.totalorder %s695_s1, %s695_s1 }
  0x20   :  { %p702_p0 = por %p701_p13, %p700_p12 }
  0x22   :  { %p703_p1 = pnand %p702_p0, %p696_p11 }
  0x24   :  { %706 = shalt.err (!%p703_p1)
}
  0x25   :  { %60 = dma.hbm_to_vmem [thread:$0]  %s1040_s3, 2048, %s55_s16, [#allocation9], %s850_s11, %s850_s11, %s851_s12  }
  0x26   :  { %s707_s30 = scalar_lea.hbm %s1042_s5, 2048 }
  0x27   :  { %p708_p2 = scmp.ne.s32.totalorder %s1042_s5, %s707_s30  ;;  %p711_p3 = scmp.lt.u32.totalorder %s707_s30, %s1042_s5 }
  0x29   :  { %p713_p4 = pnand %p711_p3, %p708_p2 }
  0x2b   :  { %716 = shalt.err (!%p713_p4)
}
  0x2c   :  { %s717_s14 = scalar_lea.vmem %s77_s18, 2048  ;;  %p722_p6 = scmp.lt.s32.totalorder %s77_s18, %s77_s18 }
  0x2d   :  { %p718_p5 = scmp.ne.s32.totalorder %s77_s18, %s717_s14  ;;  %p723_p7 = scmp.lt.s32.totalorder %s717_s14, %s717_s14 }
  0x2f   :  { %p724_p8 = por %p723_p7, %p722_p6 }
  0x31   :  { %p725_p9 = pnand %p724_p8, %p718_p5 }
  0x33   :  { %728 = shalt.err (!%p725_p9)
}
  0x34   :  { %82 = dma.hbm_to_vmem [thread:$0]  %s1042_s5, 2048, %s77_s18, [#allocation12], %s850_s11, %s850_s11, %s851_s12  }
  0x35   :  { %s854_s16 = smov [#allocation2]   ;;  %s855_s19 = smov [#allocation7]  }
  0x36   :  { %s23_s17 = sshll.u32 %s854_s16, 4  ;;  %s45_s20 = sshll.u32 %s855_s19, 4  ;;  %s24_s17 = int_to_ptr.vmem [resolvable:$true] %s23_s17  ;;  %s46_s20 = int_to_ptr.vmem [resolvable:$true] %s45_s20 }
  0x37   :  { %s729_s23 = scalar_lea.hbm %s1037_s0, 128 }
  0x38   :  { %p730_p10 = scmp.ne.s32.totalorder %s1037_s0, %s729_s23  ;;  %p733_p11 = scmp.lt.u32.totalorder %s729_s23, %s1037_s0 }
  0x3a   :  { %p735_p12 = pnand %p733_p11, %p730_p10 }
  0x3c   :  { %738 = shalt.err (!%p735_p12)
}
  0x3d   :  { %s739_s5 = scalar_lea.vmem %s24_s17, 128  ;;  %p744_p0 = scmp.lt.s32.totalorder %s24_s17, %s24_s17 }
  0x3e   :  { %p740_p13 = scmp.ne.s32.totalorder %s24_s17, %s739_s5  ;;  %p745_p1 = scmp.lt.s32.totalorder %s739_s5, %s739_s5 }
  0x40   :  { %p746_p2 = por %p745_p1, %p744_p0 }
  0x42   :  { %p747_p3 = pnand %p746_p2, %p740_p13 }
  0x44   :  { %750 = shalt.err (!%p747_p3)
}
  0x45   :  { %26 = dma.hbm_to_vmem [thread:$0]  %s1037_s0, 128, %s24_s17, [#allocation3]  }
  0x46   :  { %s751_s28 = scalar_lea.hbm %s1039_s2, 16 }
  0x47   :  { %p752_p4 = scmp.ne.s32.totalorder %s1039_s2, %s751_s28  ;;  %p755_p5 = scmp.lt.u32.totalorder %s751_s28, %s1039_s2 }
  0x49   :  { %p757_p6 = pnand %p755_p5, %p752_p4 }
  0x4b   :  { %760 = shalt.err (!%p757_p6)
}
  0x4c   :  { %s761_s10 = scalar_lea.vmem %s46_s20, 16  ;;  %s765_s13 = scalar_lea.vmem %s46_s20, 32 }
  0x4d   :  { %p762_p7 = scmp.ne.s32.totalorder %s46_s20, %s761_s10  ;;  %p766_p8 = scmp.lt.s32.totalorder %s46_s20, %s46_s20 }
  0x4e   :  { %p767_p9 = scmp.lt.s32.totalorder %s765_s13, %s761_s10 }
  0x50   :  { %p768_p10 = por %p767_p9, %p766_p8 }
  0x52   :  { %p769_p11 = pnand %p768_p10, %p762_p7 }
  0x54   :  { %772 = shalt.err (!%p769_p11)
}
  0x55   :  { %48 = dma.hbm_to_vmem [thread:$0]  %s1039_s2, 16, %s46_s20, [#allocation6]  }
  0x56   :  { %s856_s3 = smov [#allocation10]   ;;  %s857_s16 = smov [#allocation13]  }
  0x57   :  { %s67_s15 = sshll.u32 %s856_s3, 4  ;;  %s89_s17 = sshll.u32 %s857_s16, 4  ;;  %s68_s15 = int_to_ptr.vmem [resolvable:$true] %s67_s15  ;;  %s90_s17 = int_to_ptr.vmem [resolvable:$true] %s89_s17 }
  0x58   :  { %s773_s22 = scalar_lea.hbm %s1041_s4, 16 }
  0x59   :  { %p774_p12 = scmp.ne.s32.totalorder %s1041_s4, %s773_s22  ;;  %p777_p13 = scmp.lt.u32.totalorder %s773_s22, %s1041_s4 }
  0x5b   :  { %p779_p0 = pnand %p777_p13, %p774_p12 }
  0x5d   :  { %782 = shalt.err (!%p779_p0)
}
  0x5e   :  { %s783_s2 = scalar_lea.vmem %s68_s15, 16  ;;  %s787_s20 = scalar_lea.vmem %s68_s15, 32 }
  0x5f   :  { %p784_p1 = scmp.ne.s32.totalorder %s68_s15, %s783_s2  ;;  %p788_p2 = scmp.lt.s32.totalorder %s68_s15, %s68_s15 }
  0x60   :  { %p789_p3 = scmp.lt.s32.totalorder %s787_s20, %s783_s2 }
  0x62   :  { %p790_p4 = por %p789_p3, %p788_p2 }
  0x64   :  { %p791_p5 = pnand %p790_p4, %p784_p1 }
  0x66   :  { %794 = shalt.err (!%p791_p5)
}
  0x67   :  { %70 = dma.hbm_to_vmem [thread:$0]  %s1041_s4, 16, %s68_s15, [#allocation9]  }
  0x68   :  { %s795_s18 = scalar_lea.hbm %s1043_s6, 16 }
  0x69   :  { %p796_p6 = scmp.ne.s32.totalorder %s1043_s6, %s795_s18  ;;  %p799_p7 = scmp.lt.u32.totalorder %s795_s18, %s1043_s6 }
  0x6b   :  { %p801_p8 = pnand %p799_p7, %p796_p6 }
  0x6d   :  { %804 = shalt.err (!%p801_p8)
}
  0x6e   :  { %s805_s8 = scalar_lea.vmem %s90_s17, 16  ;;  %s809_s9 = scalar_lea.vmem %s90_s17, 32 }
  0x6f   :  { %p806_p9 = scmp.ne.s32.totalorder %s90_s17, %s805_s8  ;;  %p810_p10 = scmp.lt.s32.totalorder %s90_s17, %s90_s17 }
  0x70   :  { %p811_p11 = scmp.lt.s32.totalorder %s809_s9, %s805_s8 }
  0x72   :  { %p812_p12 = por %p811_p11, %p810_p10 }
  0x74   :  { %p813_p13 = pnand %p812_p12, %p806_p9 }
  0x76   :  { %816 = shalt.err (!%p813_p13)
}
  0x77   :  { %92 = dma.hbm_to_vmem [thread:$0]  %s1043_s6, 16, %s90_s17, [#allocation12]  }
  0x78   :  { %839 = dma.done.wait [#allocation3], 128  }
  0x79   :  { %840 = vsyncadd [#allocation3], 4294967168 }
  0x7a   :  { %841 = dma.done.wait [#allocation6], 2064  }
  0x7b   :  { %842 = vsyncadd [#allocation6], 4294965232 }
  0x7c   :  { %843 = dma.done.wait [#allocation9], 2064  }
  0x7d   :  { %844 = vsyncadd [#allocation9], 4294965232 }
  0x7e   :  { %845 = dma.done.wait [#allocation12], 2064  }
  0x7f   :  { %846 = vsyncadd [#allocation12], 4294965232  ;;  %v858_v0 = vmov 0.0|0.0   ;;  %vm859_vm0 = vmmov 0   ;;  %v860_v1 = vmov 0.0   ;;  %v115_v2 = vld [vmem:[#allocation5] sm:$0xff] }
  0x80   :  { %574 = vmatprep.subr.bf16.mxu0 %v858_v0  ;;  %501 = vmatprep.mubr.msk.f32.mxu0 %vm859_vm0, %v860_v1  ;;  %v116_v3 = vld [vmem:[#allocation5 + $0x8] sm:$0xff]  ;;  %v117_v4 = vld [vmem:[#allocation5 + $0x10] sm:$0xff]  ;;  %v118_v6 = vld [vmem:[#allocation5 + $0x18] sm:$0xff]  ;;  %s861_s6 = smov [#allocation14]  }
  0x81   :  { %598 = vmatprep.subr.bf16.mxu1 %v858_v0  ;;  %536 = vmatprep.mubr.msk.f32.mxu1 %vm859_vm0, %v860_v1  ;;  %v575_v5 = vpack.c.bf16 %v116_v3, %v115_v2  ;;  %v578_v7 = vpack.c.bf16 %v118_v6, %v117_v4  ;;  %v119_v8 = vld [vmem:[#allocation5 + $0x20] sm:$0xff]  ;;  %v120_v9 = vld [vmem:[#allocation5 + $0x28] sm:$0xff]  ;;  %v211_v12 = vld [vmem:[#allocation8 + $0x10] sm:$0xff]  ;;  %s403_s13 = sshll.u32 %s861_s6, 4  ;;  %s404_s13 = int_to_ptr.vmem [resolvable:$true] %s403_s13 }
  0x82   :  { %v209_v10 = vld [vmem:[#allocation8] sm:$0xff]  ;;  %v210_v11 = vld [vmem:[#allocation8 + $0x8] sm:$0xff]  ;;  %v212_v13 = vld [vmem:[#allocation8 + $0x18] sm:$0xff]  ;;  %v581_v14 = vpack.c.bf16 %v120_v9, %v119_v8  ;;  %s817_s0 = scalar_lea.vmem %s404_s13, 128  ;;  %p822_p1 = scmp.lt.s32.totalorder %s404_s13, %s404_s13 }
  0x83   :  { %576 = vmatpush3.bf16.msra.mxu0 %v575_v5  ;;  %v599_v15 = vpack.c.bf16 %v210_v11, %v209_v10  ;;  %v121_v16 = vld [vmem:[#allocation5 + $0x30] sm:$0xff]  ;;  %v122_v17 = vld [vmem:[#allocation5 + $0x38] sm:$0xff]  ;;  %v602_v18 = vpack.c.bf16 %v212_v13, %v211_v12  ;;  %v213_v19 = vld [vmem:[#allocation8 + $0x20] sm:$0xff]  ;;  %p818_p0 = scmp.ne.s32.totalorder %s404_s13, %s817_s0  ;;  %p823_p2 = scmp.lt.s32.totalorder %s817_s0, %s817_s0 }
  0x84   :  { %577 = vmatprep.subr.bf16.mxu0 %v858_v0  ;;  %v214_v20 = vld [vmem:[#allocation8 + $0x28] sm:$0xff]  ;;  %v584_v21 = vpack.c.bf16 %v122_v17, %v121_v16  ;;  %v123_v22 = vld [vmem:[#allocation5 + $0x40] sm:$0xff]  ;;  %v215_v25 = vld [vmem:[#allocation8 + $0x30] sm:$0xff] }
  0x85   :  { %600 = vmatpush3.bf16.msra.mxu1 %v599_v15  ;;  %v124_v23 = vld [vmem:[#allocation5 + $0x48] sm:$0xff]  ;;  %v605_v24 = vpack.c.bf16 %v214_v20, %v213_v19  ;;  %v216_v26 = vld [vmem:[#allocation8 + $0x38] sm:$0xff]  ;;  %v125_v28 = vld [vmem:[#allocation5 + $0x50] sm:$0xff]  ;;  %p824_p3 = por %p823_p2, %p822_p1 }
  0x86   :  { %601 = vmatprep.subr.bf16.mxu1 %v858_v0  ;;  %v587_v27 = vpack.c.bf16 %v124_v23, %v123_v22  ;;  %v126_v29 = vld [vmem:[#allocation5 + $0x58] sm:$0xff]  ;;  %v608_v30 = vpack.c.bf16 %v216_v26, %v215_v25  ;;  %v217_v31 = vld [vmem:[#allocation8 + $0x40] sm:$0xff]  ;;  %v218_v32 = vld [vmem:[#allocation8 + $0x48] sm:$0xff] }
  0x87   :  { %579 = vmatpush3.bf16.msra.mxu0 %v578_v7  ;;  %v590_v33 = vpack.c.bf16 %v126_v29, %v125_v28  ;;  %v127_v34 = vld [vmem:[#allocation5 + $0x60] sm:$0xff]  ;;  %v128_v35 = vld [vmem:[#allocation5 + $0x68] sm:$0xff]  ;;  %v611_v36 = vpack.c.bf16 %v218_v32, %v217_v31  ;;  %v129_v38 = vld [vmem:[#allocation5 + $0x70] sm:$0xff]  ;;  %p825_p4 = pnand %p824_p3, %p818_p0 }
  0x88   :  { %580 = vmatprep.subr.bf16.mxu0 %v858_v0  ;;  %v593_v37 = vpack.c.bf16 %v128_v35, %v127_v34  ;;  %v130_v39 = vld [vmem:[#allocation5 + $0x78] sm:$0xff]  ;;  %v221_v45 = vld [vmem:[#allocation8 + $0x60] sm:$0xff]  ;;  %v222_v46 = vld [vmem:[#allocation8 + $0x68] sm:$0xff] }
  0x89   :  { %603 = vmatpush3.bf16.msra.mxu1 %v602_v18  ;;  %v596_v40 = vpack.c.bf16 %v130_v39, %v129_v38  ;;  %v114_v41 = vld [vmem:[#allocation2] sm:$0xff]  ;;  %v617_v47 = vpack.c.bf16 %v222_v46, %v221_v45  ;;  %v303_v51 = vld [vmem:[#allocation11] sm:$0xff]  ;;  %v304_v52 = vld [vmem:[#allocation11 + $0x8] sm:$0xff] }
  0x8a   :  { %604 = vmatprep.subr.bf16.mxu1 %v858_v0  ;;  %v219_v42 = vld [vmem:[#allocation8 + $0x50] sm:$0xff]  ;;  %v220_v43 = vld [vmem:[#allocation8 + $0x58] sm:$0xff]  ;;  %v623_v54 = vpack.c.bf16 %v304_v52, %v303_v51  ;;  %v307_v57 = vld [vmem:[#allocation11 + $0x20] sm:$0xff] }
  0x8b   :  { %582 = vmatpush3.bf16.msra.mxu0 %v581_v14  ;;  %v614_v44 = vpack.c.bf16 %v220_v43, %v219_v42  ;;  %v223_v48 = vld [vmem:[#allocation8 + $0x70] sm:$0xff]  ;;  %v224_v49 = vld [vmem:[#allocation8 + $0x78] sm:$0xff]  ;;  %v311_v63 = vld [vmem:[#allocation11 + $0x40] sm:$0xff] }
  0x8c   :  { %583 = vmatprep.subr.bf16.mxu0 %v858_v0  ;;  %v620_v50 = vpack.c.bf16 %v224_v49, %v223_v48  ;;  %v305_v53 = vld [vmem:[#allocation11 + $0x10] sm:$0xff]  ;;  %v306_v55 = vld [vmem:[#allocation11 + $0x18] sm:$0xff]  ;;  %v308_v58 = vld [vmem:[#allocation11 + $0x28] sm:$0xff] }
  0x8d   :  { %606 = vmatpush3.bf16.msra.mxu1 %v605_v24  ;;  %v626_v56 = vpack.c.bf16 %v306_v55, %v305_v53  ;;  %v629_v59 = vpack.c.bf16 %v308_v58, %v307_v57  ;;  %v309_v60 = vld [vmem:[#allocation11 + $0x30] sm:$0xff]  ;;  %v310_v61 = vld [vmem:[#allocation11 + $0x38] sm:$0xff]  ;;  %v315_v11 = vld [vmem:[#allocation11 + $0x60] sm:$0xff] }
  0x8e   :  { %607 = vmatprep.subr.bf16.mxu1 %v858_v0  ;;  %v632_v62 = vpack.c.bf16 %v310_v61, %v309_v60  ;;  %v415_v3 = vld [vmem:[#allocation7] ss:$0 sm:$0xff]  ;;  %v313_v8 = vld [vmem:[#allocation11 + $0x50] sm:$0xff]  ;;  %v316_v12 = vld [vmem:[#allocation11 + $0x68] sm:$0xff] }
  0x8f   :  { %585 = vmatpush3.bf16.msra.mxu0 %v584_v21  ;;  %v314_v9 = vld [vmem:[#allocation11 + $0x58] sm:$0xff]  ;;  %v641_v13 = vpack.c.bf16 %v316_v12, %v315_v11  ;;  %v317_v14 = vld [vmem:[#allocation11 + $0x70] sm:$0xff]  ;;  %v417_v22 = vld [vmem:[#allocation13] ss:$0 sm:$0xff] }
  0x90   :  { %586 = vmatprep.subr.bf16.mxu0 %v858_v0  ;;  %v638_v10 = vpack.c.bf16 %v314_v9, %v313_v8  ;;  %v318_v15 = vld [vmem:[#allocation11 + $0x78] sm:$0xff] }
  0x91   :  { %609 = vmatpush3.bf16.msra.mxu1 %v608_v30  ;;  %v644_v16 = vpack.c.bf16 %v318_v15, %v317_v14  ;;  %v416_v17 = vld [vmem:[#allocation10] ss:$0 sm:$0xff] }
  0x92   :  { %610 = vmatprep.subr.bf16.mxu1 %v858_v0 }
  0x93   :  { %588 = vmatpush3.bf16.msra.mxu0 %v587_v27 }
  0x94   :  { %589 = vmatprep.subr.bf16.mxu0 %v858_v0 }
  0x95   :  { %612 = vmatpush3.bf16.msra.mxu1 %v611_v36 }
  0x96   :  { %613 = vmatprep.subr.bf16.mxu1 %v858_v0 }
  0x97   :  { %591 = vmatpush3.bf16.msra.mxu0 %v590_v33 }
  0x98   :  { %592 = vmatprep.subr.bf16.mxu0 %v858_v0 }
  0x99   :  { %615 = vmatpush3.bf16.msra.mxu1 %v614_v44 }
  0x9a   :  { %616 = vmatprep.subr.bf16.mxu1 %v858_v0 }
  0x9b   :  { %594 = vmatpush3.bf16.msra.mxu0 %v593_v37 }
  0x9c   :  { %595 = vmatprep.subr.bf16.mxu0 %v858_v0 }
  0x9d   :  { %618 = vmatpush3.bf16.msra.mxu1 %v617_v47 }
  0x9e   :  { %619 = vmatprep.subr.bf16.mxu1 %v858_v0 }
  0x9f   :  { %597 = vmatpush3.bf16.msra.mxu0 %v596_v40 }
  0xa0   :  { %622 = vmatprep.subr.bf16.mxu0 %v858_v0 }
  0xa1   :  { %621 = vmatpush3.bf16.msra.mxu1 %v620_v50 }
  0xa2   :  { %502 = vmatmul.mubr.f32.vlgmr.msra.gmra.mrb[0].mxu0 %v114_v41 }
  0xa3   :  { %571 = vmatprep.mubr.msk.f32.mxu0 %vm859_vm0, %v860_v1  ;;  %624 = vmatpush3.bf16.msra.mxu0 %v623_v54  ;;  %v312_v1 = vld [vmem:[#allocation11 + $0x48] sm:$0xff] }
  0xa4   :  { %625 = vmatprep.subr.bf16.mxu0 %v858_v0  ;;  %v635_v2 = vpack.c.bf16 %v312_v1, %v311_v63 }
  0xa7   :  { %627 = vmatpush3.bf16.msra.mxu0 %v626_v56 }
  0xa8   :  { %628 = vmatprep.subr.bf16.mxu0 %v858_v0 }
  0xab   :  { %630 = vmatpush3.bf16.msra.mxu0 %v629_v59 }
  0xac   :  { %631 = vmatprep.subr.bf16.mxu0 %v858_v0 }
  0xaf   :  { %633 = vmatpush3.bf16.msra.mxu0 %v632_v62 }
  0xb0   :  { %634 = vmatprep.subr.bf16.mxu0 %v858_v0 }
  0xb3   :  { %636 = vmatpush3.bf16.msra.mxu0 %v635_v2 }
  0xb4   :  { %637 = vmatprep.subr.bf16.mxu0 %v858_v0 }
  0xb7   :  { %639 = vmatpush3.bf16.msra.mxu0 %v638_v10 }
  0xb8   :  { %640 = vmatprep.subr.bf16.mxu0 %v858_v0 }
  0xbb   :  { %642 = vmatpush3.bf16.msra.mxu0 %v641_v13 }
  0xbc   :  { %643 = vmatprep.subr.bf16.mxu0 %v858_v0 }
  0xbf   :  { %645 = vmatpush3.bf16.msra.mxu0 %v644_v16 }
 0x175   :  { %v204_v4 = vpop.f32.mrb[0].mxu0 }
 0x176   :  { %v205_v5 = vadd.f32 %v415_v3, %v204_v4  ;;  %v503_v6 = vpop.f32.mrb[1].mxu0 }
 0x178   :  { %659 = vtanh.f32 %v205_v5 }
 0x182   :  { %v660_v7 = vpop.eup %659 }
 0x183   :  { %537 = vmatmul.mubr.f32.vlgmr.msra.gmra.mrb[0].mxu1 %v660_v7 }
 0x256   :  { %v298_v18 = vpop.f32.mrb[0].mxu1 }
 0x257   :  { %v299_v19 = vadd.f32 %v416_v17, %v298_v18  ;;  %v538_v20 = vpop.f32.mrb[1].mxu1 }
 0x259   :  { %661 = vtanh.f32 %v299_v19 }
 0x263   :  { %v662_v21 = vpop.eup %661 }
 0x264   :  { %572 = vmatmul.mubr.f32.vlgmr.msra.gmra.mrb[2].mxu0 %v662_v21 }
 0x337   :  { %v392_v23 = vpop.f32.mrb[2].mxu0 }
 0x338   :  { %v393_v24 = vadd.f32 %v417_v22, %v392_v23  ;;  %v573_v25 = vpop.f32.mrb[3].mxu0 }
 0x33a   :  { %396 = vst [vmem:[#allocation14] sm:$0xff] %v393_v24 }
 0x33b   :  { %828 = shalt.err (!%p825_p4)
}
 0x33c   :  { %s829_s15 = scalar_lea.hbm %s1044_s7, 128 }
 0x33d   :  { %p830_p5 = scmp.ne.s32.totalorder %s1044_s7, %s829_s15  ;;  %p833_p6 = scmp.lt.u32.totalorder %s829_s15, %s1044_s7 }
 0x33f   :  { %p835_p7 = pnand %p833_p6, %p830_p5 }
 0x341   :  { %838 = shalt.err (!%p835_p7)
}
 0x342   :  { %406 = dma.vmem_to_hbm [thread:$0]  %s404_s13, 128, %s1044_s7, [#allocation4]  }
 0x343   :  { %847 = dma.done.wait [#allocation4], 128  }
 0x344   :  { %848 = vsyncadd [#allocation4], 4294967168 }
 0x345   :  { %410 = vsyncpa [#allocation3], 1 }
 0x346   :  { %411 = vsyncpa [#allocation6], 1 }
 0x347   :  { %412 = vsyncpa [#allocation9], 1 }
 0x348   :  { %413 = vsyncpa [#allocation12], 1 }
 0x349   :  { %414 = vsyncpa [#allocation4], 1 }

</bundles_post_ra>
